<compile_context>
chip_gen: v6e
topology: v6e:2x2x1
jax: 0.10.0
libtpu: 0.0.40
codegen_flags: <defaults>
</compile_context>

<pallas_src>
import functools

import jax
import jax.numpy as jnp
from jax.experimental import pallas as pl
from jax.experimental.pallas import tpu as pltpu


def _pose_loss_kernel(pc_ref, dmT_ref, out_ref, acc_ref, *, tile_n):
    t = pl.program_id(1)

    @pl.when(t == 0)
    def _():
        acc_ref[...] = jnp.zeros_like(acc_ref)

    pc = pc_ref[0]      # (3, tile_n)  lane-dense point coordinates
    dmT = dmT_ref[0]    # (4, 4) with dmT[j, k] = dM[k, j]; column 3 = bias row

    # d[j, :] = sum_{k<3} pc[k, :] * dM[k, j] + dM[3, j]   (homogeneous w == 1)
    d = dmT[:, 0:1] * pc[0:1, :]
    d = d + dmT[:, 1:2] * pc[1:2, :]
    d = d + dmT[:, 2:3] * pc[2:3, :]
    d = d + dmT[:, 3:4]

    acc_ref[...] = acc_ref[...] + d * d

    @pl.when(t == pl.num_programs(1) - 1)
    def _():
        a = acc_ref[...]                     # (4, tile_n)
        s = a[:, 0:128]
        for g in range(1, tile_n // 128):    # static, lane-aligned fold
            s = s + a[:, g * 128:(g + 1) * 128]
        out_ref[0] = s                       # per-batch (4, 128) partial sum


def pose_loss(pred_RT, sample_pc, regress_mat, rot_mat_inv, norm_mat, K=None,
              *, max_tile_n=2048):
    """JAX/Pallas equivalent of PoseLoss.forward.

    Returns (loss, {'loss': loss, 'rotpc_loss': loss}).
    Note: the argument named `norm_mat` corresponds to `norm_mat_inv` in the
    PyTorch reference (same tensor, kept under the original batch key name).
    """
    B, N, _ = sample_pc.shape
    # TODO(synk): ragged N (not a multiple of 128) would need a masked tail tile.
    assert N % 128 == 0, "point count must be a multiple of 128"
    tile_n = 128
    while tile_n * 2 <= min(max_tile_n, N) and N % (tile_n * 2) == 0:
        tile_n *= 2

    f32 = jnp.float32
    pred_RT = pred_RT.astype(f32)
    regress_mat = regress_mat.astype(f32)
    rot_mat_inv = rot_mat_inv.astype(f32)
    norm_mat = norm_mat.astype(f32)

    # pred_regress_mat = norm_mat @ rot_mat_inv @ pred_RT ; fold into one delta:
    # homo_pc @ dM == pred_3d - gt_3d
    dM = norm_mat @ rot_mat_inv @ pred_RT - regress_mat          # (B, 4, 4)
    dMT = jnp.swapaxes(dM, 1, 2)                                 # dMT[b,j,k] = dM[b,k,j]
    # TODO(synk): pred_trans_mat = pred_regress_mat @ K is dead code in the
    # reference forward (never used for the loss), so it is not computed.

    # Lane-dense layout: point index on lanes.
    pc3 = jnp.swapaxes(sample_pc.astype(f32), 1, 2)              # (B, 3, N)

    kernel = functools.partial(_pose_loss_kernel, tile_n=tile_n)
    partial = pl.pallas_call(
        kernel,
        out_shape=jax.ShapeDtypeStruct((B, 4, 128), f32),
        grid_spec=pltpu.PrefetchScalarGridSpec(
            num_scalar_prefetch=0,
            grid=(B, N // tile_n),
            in_specs=[
                pl.BlockSpec((1, 3, tile_n), lambda b, t: (b, 0, t)),  # points
                pl.BlockSpec((1, 4, 4), lambda b, t: (b, 0, 0)),       # dM^T
            ],
            out_specs=pl.BlockSpec((1, 4, 128), lambda b, t: (b, 0, 0)),
            scratch_shapes=[pltpu.VMEM((4, tile_n), f32)],
        ),
        compiler_params=pltpu.CompilerParams(
            dimension_semantics=("parallel", "arbitrary")),
    )(pc3, dMT)

    # F.mse_loss default 'mean' reduction over B*N*4 elements.
    loss = jnp.sum(partial) / jnp.float32(B * N * 4)
    return loss, {"loss": loss, "rotpc_loss": loss}


if __name__ == "__main__":
    key = jax.random.PRNGKey(0)
    B, N = 2, 128
    k1, k2, k3, k4, k5, k6 = jax.random.split(key, 6)
    sample_pc = jax.random.normal(k1, (B, N, 3), jnp.float32)
    regress_mat = jax.random.normal(k2, (B, 4, 4), jnp.float32)
    pred_RT = jax.random.normal(k3, (B, 4, 4), jnp.float32)
    rot_mat_inv = jax.random.normal(k4, (B, 4, 4), jnp.float32)
    norm_mat = jax.random.normal(k5, (B, 4, 4), jnp.float32)
    K_mat = jax.random.normal(k6, (B, 4, 4), jnp.float32)

    loss, loss_dict = pose_loss(pred_RT, sample_pc, regress_mat,
                                rot_mat_inv, norm_mat, K_mat)
    loss = jax.block_until_ready(loss)

    # Pure-JAX reference (same semantics as the PyTorch forward).
    homo = jnp.concatenate([sample_pc, jnp.ones((B, N, 1), jnp.float32)], -1)
    prm = norm_mat @ rot_mat_inv @ pred_RT
    ref = jnp.mean((homo @ prm - homo @ regress_mat) ** 2)
    assert jnp.allclose(loss, ref, rtol=1e-4, atol=1e-4), (loss, ref)
    assert jnp.allclose(loss_dict["rotpc_loss"], ref, rtol=1e-4, atol=1e-4)

    print("KERNEL_OK")
</pallas_src>

<mosaic_0001>
module attributes {stable_mosaic.version = 11 : i64} {
  func.func @_pose_loss_kernel(%arg0: i32, %arg1: i32, %arg2: memref<1x3x128xf32, #tpu.memory_space<vmem>>, %arg3: memref<1x4x4xf32, #tpu.memory_space<vmem>>, %arg4: memref<1x4x128xf32, #tpu.memory_space<vmem>>, %arg5: memref<4x128xf32, #tpu.memory_space<vmem>>) attributes {dimension_semantics = [#tpu.dimension_semantics<parallel>, #tpu.dimension_semantics<arbitrary>], iteration_bounds = array<i64: 2, 1>, scalar_prefetch = 0 : i64, scratch_operands = 1 : i64, tpu.core_type = #tpu.core_type<tc>, window_params = [{transform_indices = @transform_0, window_bounds = array<i64: 1, 3, 128>}, {transform_indices = @transform_1, window_bounds = array<i64: 1, 4, 4>}, {transform_indices = @transform_2, window_bounds = array<i64: 1, 4, 128>}]} {
    %c0_i32 = arith.constant 0 : i32
    %0 = arith.cmpi eq, %arg1, %c0_i32 : i32
    %1 = arith.extui %0 : i1 to i32
    %c0_i32_0 = arith.constant 0 : i32
    %2 = arith.cmpi ne, %1, %c0_i32_0 : i32
    scf.if %2 {
      %cst = arith.constant 0.000000e+00 : f32
      %34 = vector.broadcast %cst : f32 to vector<4x128xf32>
      %c0_12 = arith.constant 0 : index
      %c0_13 = arith.constant 0 : index
      %35 = vector.load %arg5[%c0_12, %c0_13] : memref<4x128xf32, #tpu.memory_space<vmem>>, vector<4x128xf32>
      tpu.vector_store %arg5[%c0_12, %c0_13], %34 {strides = array<i32>} : memref<4x128xf32, #tpu.memory_space<vmem>>, vector<4x128xf32>,
    } else {
    }
    %c0 = arith.constant 0 : index
    %c0_1 = arith.constant 0 : index
    %c0_2 = arith.constant 0 : index
    %3 = vector.load %arg2[%c0, %c0_1, %c0_2] : memref<1x3x128xf32, #tpu.memory_space<vmem>>, vector<1x3x128xf32>
    %4 = vector.shape_cast %3 : vector<1x3x128xf32> to vector<3x128xf32>
    %c0_3 = arith.constant 0 : index
    %c0_4 = arith.constant 0 : index
    %c0_5 = arith.constant 0 : index
    %5 = vector.load %arg3[%c0_3, %c0_4, %c0_5] : memref<1x4x4xf32, #tpu.memory_space<vmem>>, vector<1x4x4xf32>
    %6 = vector.shape_cast %5 : vector<1x4x4xf32> to vector<4x4xf32>
    %7 = vector.extract_strided_slice %6 {offsets = [0, 0], sizes = [4, 1], strides = [1, 1]} : vector<4x4xf32> to vector<4x1xf32>
    %8 = vector.extract_strided_slice %4 {offsets = [0, 0], sizes = [1, 128], strides = [1, 1]} : vector<3x128xf32> to vector<1x128xf32>
    %9 = vector.broadcast %7 : vector<4x1xf32> to vector<4x128xf32>
    %10 = vector.broadcast %8 : vector<1x128xf32> to vector<4x128xf32>
    %11 = arith.mulf %9, %10 : vector<4x128xf32>
    %12 = vector.extract_strided_slice %6 {offsets = [0, 1], sizes = [4, 1], strides = [1, 1]} : vector<4x4xf32> to vector<4x1xf32>
    %13 = vector.extract_strided_slice %4 {offsets = [1, 0], sizes = [1, 128], strides = [1, 1]} : vector<3x128xf32> to vector<1x128xf32>
    %14 = vector.broadcast %12 : vector<4x1xf32> to vector<4x128xf32>
    %15 = vector.broadcast %13 : vector<1x128xf32> to vector<4x128xf32>
    %16 = arith.mulf %14, %15 : vector<4x128xf32>
    %17 = arith.addf %11, %16 : vector<4x128xf32>
    %18 = vector.extract_strided_slice %6 {offsets = [0, 2], sizes = [4, 1], strides = [1, 1]} : vector<4x4xf32> to vector<4x1xf32>
    %19 = vector.extract_strided_slice %4 {offsets = [2, 0], sizes = [1, 128], strides = [1, 1]} : vector<3x128xf32> to vector<1x128xf32>
    %20 = vector.broadcast %18 : vector<4x1xf32> to vector<4x128xf32>
    %21 = vector.broadcast %19 : vector<1x128xf32> to vector<4x128xf32>
    %22 = arith.mulf %20, %21 : vector<4x128xf32>
    %23 = arith.addf %17, %22 : vector<4x128xf32>
    %24 = vector.extract_strided_slice %6 {offsets = [0, 3], sizes = [4, 1], strides = [1, 1]} : vector<4x4xf32> to vector<4x1xf32>
    %25 = vector.broadcast %24 : vector<4x1xf32> to vector<4x128xf32>
    %26 = arith.addf %23, %25 : vector<4x128xf32>
    %c0_6 = arith.constant 0 : index
    %c0_7 = arith.constant 0 : index
    %27 = vector.load %arg5[%c0_6, %c0_7] : memref<4x128xf32, #tpu.memory_space<vmem>>, vector<4x128xf32>
    %28 = arith.mulf %26, %26 : vector<4x128xf32>
    %29 = arith.addf %27, %28 : vector<4x128xf32>
    %c0_8 = arith.constant 0 : index
    %c0_9 = arith.constant 0 : index
    %30 = vector.load %arg5[%c0_8, %c0_9] : memref<4x128xf32, #tpu.memory_space<vmem>>, vector<4x128xf32>
    tpu.vector_store %arg5[%c0_8, %c0_9], %29 {strides = array<i32>} : memref<4x128xf32, #tpu.memory_space<vmem>>, vector<4x128xf32>,
    %c0_i32_10 = arith.constant 0 : i32
    %31 = arith.cmpi eq, %arg1, %c0_i32_10 : i32
    %32 = arith.extui %31 : i1 to i32
    %c0_i32_11 = arith.constant 0 : i32
    %33 = arith.cmpi ne, %32, %c0_i32_11 : i32
    scf.if %33 {
      %c0_12 = arith.constant 0 : index
      %c0_13 = arith.constant 0 : index
      %34 = vector.load %arg5[%c0_12, %c0_13] : memref<4x128xf32, #tpu.memory_space<vmem>>, vector<4x128xf32>
      %c0_14 = arith.constant 0 : index
      %c0_15 = arith.constant 0 : index
      %c0_16 = arith.constant 0 : index
      %35 = vector.load %arg4[%c0_14, %c0_15, %c0_16] : memref<1x4x128xf32, #tpu.memory_space<vmem>>, vector<1x4x128xf32>
      %36 = vector.shape_cast %35 : vector<1x4x128xf32> to vector<4x128xf32>
      %37 = vector.shape_cast %34 : vector<4x128xf32> to vector<1x4x128xf32>
      tpu.vector_store %arg4[%c0_14, %c0_15, %c0_16], %37 {strides = array<i32>} : memref<1x4x128xf32, #tpu.memory_space<vmem>>, vector<1x4x128xf32>,
    } else {
    }
    return
  }
  func.func @transform_0(%arg0: i32, %arg1: i32) -> (i32, i32, i32) {
    %c0_i32 = arith.constant 0 : i32
    %c0_i32_0 = arith.constant 0 : i32
    return %arg0, %c0_i32, %arg1 : i32, i32, i32
  }
  func.func @transform_1(%arg0: i32, %arg1: i32) -> (i32, i32, i32) {
    %c0_i32 = arith.constant 0 : i32
    %c0_i32_0 = arith.constant 0 : i32
    %c0_i32_1 = arith.constant 0 : i32
    return %arg0, %c0_i32, %c0_i32_0 : i32, i32, i32
  }
  func.func @transform_2(%arg0: i32, %arg1: i32) -> (i32, i32, i32) {
    %c0_i32 = arith.constant 0 : i32
    %c0_i32_0 = arith.constant 0 : i32
    %c0_i32_1 = arith.constant 0 : i32
    return %arg0, %c0_i32, %c0_i32_0 : i32, i32, i32
  }
}

</mosaic_0001>

<bundles_post_ra>
// kernel: tpu_custom_call.1
= control target key start
LH: loop header
LB: loop body
LE: loop exit
PB: predicated region body
PF: predicated region fallthrough
CT: control target
= control target key end

     0   :  { %7 = vsyncpa [#allocation4], 0  ;;  %s610_s0 = inlined_call_operand.vmem [shape: f32[2,3,128], index: 0, kind: input, shape index: {}]   ;;  %s611_s1 = inlined_call_operand.vmem [shape: f32[2,4,4], index: 1, kind: input, shape index: {}]   ;;  %s612_s2 = inlined_call_operand.hbm [shape: f32[2,4,128], index: 2, kind: output, shape index: {}]  }
   0x1   :  { %9 = vsyncpa [#allocation4 + $0x1], 0  ;;  %s502_s9 = smov 0   ;;  %s504_s10 = smov 0  }
   0x2   :  { %s506_s11 = smov 0   ;;  %s508_s12 = smov 0  }
   0x3   :  { %s510_s13 = smov 0   ;;  %s512_s14 = smov 0  }
   0x4 LB: > { %s326_s15 = sadd.s32 4294967295, %s479_s14   ;;  %s327_s16 = sadd.s32 4294967294, %s479_s14   ;;  %s479_s14 = sphi %s512_s14, %s15_s14   ;;  %s475_s13 = sphi %s510_s13, %s619_s13   ;;  %s471_s12 = sphi %s508_s12, %s618_s12   ;;  %s467_s11 = sphi %s506_s11, %s617_s11   ;;  %s463_s10 = sphi %s504_s10, %s616_s10   ;;  %s459_s9 = sphi %s502_s9, %s615_s9  }
   0x5   : > { %s27_s17 = sadd.s32 1, %s475_s13  ;;  %s88_s18 = sadd.s32 1, %s467_s11 }
   0x6   : > { %p29_p0 = scmp.ge.s32.totalorder %s27_s17, 2  ;;  %p98_p1 = scmp.ne.s32.totalorder %s467_s11, %s463_s10 }
   0x7   : > { %p99_p2 = scmp.eq.s32.totalorder %s326_s15, 1  ;;  %p104_p3 = scmp.ne.s32.totalorder %s463_s10, %s459_s9 }
   0x8   : > { %s621_s17 = smov (%p29_p0, %s27_s17), 0  ;;  %p105_p5 = scmp.eq.s32.totalorder %s327_s16, 1 }
   0x9   : > { %p542_p4 = por %p99_p2, %p98_p1  ;;  %s85_s20 = ssub.s32 %s475_s13, %s621_s17 }
   0xa   : > { %p330_p6 = scmp.ge.s32.totalorder %s479_s14, 1  ;;  %p86_p7 = scmp.eq.s32.totalorder %s85_s20, 0 }
   0xb   : > { %p549_p8 = por %p105_p5, %p104_p3  ;;  %p140_p9 = scmp.lt.s32.totalorder %s479_s14, 3 }
   0xc   : > { %s555_s22 = scalar_select %p86_p7, %s467_s11, %s88_s18  }
   0xd   : > { %p141_p10 = pnand %p330_p6, %p140_p9 }
   0xe   : > { %p168_p11 = scmp.lt.s32.totalorder (!%p141_p10), %s471_s12, 1  ;;  %s165_s3 = sand.u32 (!%p141_p10), 1, %s463_s10  }
   0xf   : > { %144 = sbr.rel (%p141_p10) target bundleno = 187 (0xbb), region = 28  ;;  %s331_s4 = sshll.u32 (!%p141_p10), %s165_s3, 2 }
  0x10   : > { %s335_s5 = sshll.u32 (!%p141_p10), %s471_s12, 6  ;;  %s167_s6 = scalar_lea.vmem (!%p141_p10), [#allocation3], %s331_s4 }
  0x11   : > { %s244_s7 = sshll.u32 (!%p141_p10), %s167_s6, 4  ;;  %s570_s16 = scalar_lea.hbm (!%p141_p10), %s612_s2, %s335_s5  ;;  %s245_s7 = int_to_ptr.vmem [resolvable:$true] %s244_s7 }
  0x12   : > { %s231_s18 = scalar_lea.sflag (!%p141_p10), [#allocation4], %s165_s3  ;;  %s403_s20 = scalar_lea.vmem (!%p141_p10), %s245_s7, 64 }
  0x13   : > { %p404_p12 = scmp.ne.s32.totalorder (!%p141_p10), %s245_s7, %s403_s20 }
  0x14   : > { %v481_v0 = vmov 0   ;;  %v482_v1 = vmov 2   ;;  %s169_s23 = scalar_select %p168_p11, %s471_s12, 1  ;;  %v483_v3 = vmov 0.0   ;;  %v484_v4 = vmov 1  }
  0x15   : > { %398 = vset.pattern.permute.xlu0 %v481_v0  ;;  %400 = vset.pattern.permute.xlu1 %v482_v1  ;;  %183 = vst [vmem:[#allocation2] sm:$0xf] %v483_v3  ;;  %v485_v5 = vmov 3   ;;  %v191_v6 = vlaneseq  ;;  %p405_p13 = pnand %p404_p12, %p542_p4 }
  0x16   : > { %s332_s24 = sshll.u32 %s169_s23, 2  ;;  %s486_s23 = smov [#allocation3]  }
  0x17   : > { %s178_s27 = scalar_lea.vmem %s611_s1, %s332_s24  ;;  %v192_v7 = vshrl.u32 %v191_v6, 7  ;;  %s174_s30 = scalar_lea.vmem %s610_s0, %s332_s24 }
  0x18   : > { %v185_v2 = vld [vmem:[%s178_s27] sm:$0xf]  ;;  %p406_p0 = pneg %p405_p13  ;;  %s407_s24 = sshll.u32 %s486_s23, 4  ;;  %s408_s24 = int_to_ptr.vmem [resolvable:$false] %s407_s24 }
  0x19   : > { %188 = vperm.xlu0 %398, %v185_v2   ;;  %207 = vperm.xlu1 %400, %v185_v2   ;;  %v193_v8 = vsub.s32 0, %v192_v7  ;;  %v202_v9 = vsub.s32 1, %v192_v7  ;;  %v212_v10 = vsub.s32 2, %v192_v7  ;;  %v184_v11 = vld [vmem:[%s174_s30] sm:$0x7]  ;;  %s409_s12 = scalar_lea.vmem %s408_s24, 128  ;;  %p410_p1 = scmp.lt.s32.totalorder %s245_s7, %s408_s24 }
  0x1a   : > { %p411_p2 = scmp.lt.s32.totalorder %s409_s12, %s403_s20 }
  0x1b   : > { %v194_v13 = vrot.slane %v184_v11, %v193_v8  ;;  %v203_v14 = vrot.slane %v184_v11, %v202_v9  ;;  %v213_v15 = vrot.slane %v184_v11, %v212_v10 }
  0x1c   : > { %v221_v25 = vld [vmem:[#allocation2] sm:$0xf]  ;;  %p412_p3 = por %p411_p2, %p410_p1 }
  0x1d   : > { %399 = vset.pattern.permute.xlu0 %v484_v4  ;;  %401 = vset.pattern.permute.xlu1 %v485_v5 }
  0x1e   : > { %197 = vperm.xlu0 %399, %v185_v2   ;;  %217 = vperm.xlu1 %401, %v185_v2   ;;  %p413_p5 = pnand %p412_p3, %p406_p0 }
  0x22   : > { %402 = vset.pattern.permute.xlu0 %v485_v5 }
  0x94   : > { %v189_v12 = vpop.permute.xlu0 %188  ;;  %v208_v16 = vpop.permute.xlu1 %207 }
  0x95   : > { %v195_v18 = vmul.f32 %v194_v13, %v189_v12  ;;  %v214_v20 = vmul.f32 %v213_v15, %v208_v16 }
  0x99   : > { %v198_v17 = vpop.permute.xlu0 %197  ;;  %v218_v22 = vpop.permute.xlu1 %217 }
  0x9a   : > { %v204_v19 = vmul.f32 %v203_v14, %v198_v17 }
  0x9c   : > { %v205_v21 = vadd.f32 %v204_v19, %v195_v18 }
  0x9e   : > { %v215_v23 = vadd.f32 %v214_v20, %v205_v21 }
  0xa0   : > { %v220_v24 = vadd.f32 %v218_v22, %v215_v23 }
  0xa2   : > { %v222_v26 = vmul.f32 %v220_v24, %v220_v24 }
  0xa4   : > { %v223_v27 = vadd.f32 %v222_v26, %v221_v25 }
  0xa6   : > { %224 = vst [vmem:[#allocation2] sm:$0xf] %v223_v27 }
  0xad   : > { %v228_v28 = vld [vmem:[#allocation2] sm:$0xf] }
  0xae   : > { %229 = vst [vmem:[%s167_s6] sm:$0xf] %v228_v28 }
  0xaf   : > { %416 = shalt.err (!%p413_p5)
}
  0xb0   : > { %s417_s25 = scalar_lea.hbm %s570_s16, 64  ;;  %s421_s28 = scalar_lea.hbm %s612_s2, 128 }
  0xb1   : > { %p418_p6 = scmp.ne.s32.totalorder %s570_s16, %s417_s25  ;;  %p422_p10 = scmp.lt.s32.totalorder %s570_s16, %s612_s2 }
  0xb2   : > { %p423_p11 = scmp.lt.s32.totalorder %s421_s28, %s417_s25 }
  0xb3   : > { %p419_p7 = pnand %p418_p6, %p542_p4 }
  0xb4   : > { %p424_p12 = por %p423_p11, %p422_p10 }
  0xb5   : > { %p420_p9 = pneg %p419_p7 }
  0xb7   : > { %p425_p13 = pnand %p424_p12, %p420_p9 }
  0xb9   : > { %428 = shalt.err (!%p425_p13)
}
  0xba   : > { %338 = dma.vmem_to_hbm [thread:$0]  (%p542_p4), %s245_s7, 64, %s570_s16, %s231_s18  }
  0xbb PF: > { %p344_p0 = scmp.ge.s32.totalorder %s479_s14, 2  ;;  %s256_s3 = sand.u32 1, %s459_s9  }
  0xbc   : > { %s257_s4 = scalar_lea.sflag [#allocation4], %s256_s3 }
  0xbd   : > { %p341_p1 = pnand %p344_p0, %p549_p8 }
  0xbf   : > { %p342_p2 = pneg %p341_p1 }
  0xc1   : > { %454 = dma.done.wait (%p342_p2), %s257_s4, 64  }
  0xc2   : > { %456 = vsyncadd (%p342_p2), %s257_s4, 4294967232  ;;  %s15_s14 = sadd.s32 1, %s479_s14   ;;  %s615_s9 = smov %s463_s10 }
  0xc3   : > { %p12_p3 = scmp.ge.s32.totalorder %s15_s14, 4   ;;  %s616_s10 = smov %s467_s11 }
  0xc4   : > { %s617_s11 = smov %s555_s22  ;;  %s618_s12 = smov %s475_s13 }
  0xc5   : > { %s619_s13 = smov %s621_s17  ;;  %14 = sbr.rel (!%p12_p3) target bundleno = 4 (0x4), region = 74 }
  0xca   :  { %262 = vsyncpa [#allocation4], 1 }
  0xcb   :  { %264 = vsyncpa [#allocation4 + $0x1], 1 }

</bundles_post_ra>
